<compile_context>
chip_gen: v7x
topology: tpu7x:2x2x1
jax: 0.10.0
libtpu: 0.0.40
codegen_flags: <defaults>
</compile_context>

<pallas_src>
import functools

import jax
import jax.numpy as jnp
from jax.experimental import pallas as pl
from jax.experimental.pallas import tpu as pltpu


_TARGET_BLOCK_BYTES = 4 * 2**20   # ~f32 bytes of x per (N, TILE) block (DMA sweet spot)
_FALLBACK_VMEM_CAP = 64 * 2**20   # smallest physical VMEM across v5e/v6e/v7x (v7x)


def _vmem_capacity_bytes():
    """Physical VMEM of the local TPU generation (conservative fallback if unknown)."""
    try:
        cap = getattr(pltpu.get_tpu_info(), "vmem_capacity_bytes", None)
        if cap:
            return int(cap)
    except Exception:
        pass
    return _FALLBACK_VMEM_CAP


def _per_lane_vmem_bytes(n, itemsize):
    # Per output lane: input + output windows (double-buffered) in the input dtype
    # plus ~4 f32 kernel temporaries (f32 cast, diff, diff^2, misc).
    return n * (4 * itemsize + 16)


def _pick_tile(n, m, m_out, itemsize, budget_bytes):
    """Lane-aligned tile over the flattened x feature axis; None => single block."""
    if m < 128:
        return None
    per_lane = _per_lane_vmem_bytes(n, itemsize)
    tile_target = (_TARGET_BLOCK_BYTES // (n * 4)) // 128 * 128   # DMA sweet spot, N-aware
    tile_vmem = (budget_bytes // per_lane) // 128 * 128           # generation-aware VMEM cap
    tile = max(128, min(tile_target, tile_vmem))
    if m_out <= tile:
        return None                       # whole fused row fits one budgeted block
    return min(tile, (m // 128) * 128)    # never wider than x itself


def _copy_std_kernel(x_ref, o_ref, part_ref, *, m_total, tile, n_batch):
    """Pass 1: copy one (N, tile) block of x into the output and emit its std sum."""
    g = pl.program_id(0)

    x_orig = x_ref[...]                       # load once; reuse for cast + store
    x = x_orig.astype(jnp.float32)
    mean = jnp.mean(x, axis=0, keepdims=True)
    diff = x - mean
    # ddof=1; n_batch == 1 yields NaN, matching torch.std's default behaviour.
    var = jnp.sum(diff * diff, axis=0, keepdims=True) / jnp.float32(n_batch - 1)
    std = jnp.sqrt(var)                       # (1, tile), f32

    # Lane-dense pass-through store of the original bits.
    o_ref[...] = x_orig

    col0 = g * tile
    is_full = col0 + tile <= m_total          # only the last block can be partial

    @pl.when(is_full)
    def _():                                  # common case: no iota/compare/select
        part_ref[...] = jnp.full(part_ref.shape, jnp.sum(std), jnp.float32)

    @pl.when(jnp.logical_not(is_full))
    def _():                                  # straddle block: mask padded columns
        lane = jax.lax.broadcasted_iota(jnp.int32, std.shape, 1)
        masked = jnp.where(col0 + lane < m_total, std, 0.0)
        part_ref[...] = jnp.full(part_ref.shape, jnp.sum(masked), jnp.float32)


def _fill_stat_kernel(scalar_ref, y_ref, o_ref, *, m_total, tile, start_blk):
    """Pass 2: overwrite only the trailing stat columns of the (aliased) output."""
    g = pl.program_id(0)
    col0 = (start_blk + g) * tile
    s = scalar_ref[0, 0].astype(o_ref.dtype)
    col = col0 + jax.lax.broadcasted_iota(jnp.int32, o_ref.shape, 1)
    # jnp.where is a select: garbage/NaN from uninitialized stat columns of the
    # aliased block is never propagated; x columns (< m_total) are preserved.
    o_ref[...] = jnp.where(col < m_total, y_ref[...], s)


def _single_block_kernel(x_ref, o_ref, *, m_total, n_batch):
    """Fallback: the whole fused (N, M+H*W) row fits comfortably in one VMEM block."""
    x_orig = x_ref[...]
    x = x_orig.astype(jnp.float32)
    mean = jnp.mean(x, axis=0, keepdims=True)
    diff = x - mean
    var = jnp.sum(diff * diff, axis=0, keepdims=True) / jnp.float32(n_batch - 1)
    std = jnp.sqrt(var)
    scalar = (jnp.sum(std) / jnp.float32(m_total)).astype(o_ref.dtype)
    o_ref[:, :m_total] = x_orig
    o_ref[:, m_total:] = jnp.full(
        (o_ref.shape[0], o_ref.shape[1] - m_total), scalar, dtype=o_ref.dtype)


@functools.partial(jax.jit, static_argnames=("tile",))
def minibatch_std(x, tile=None):
    """x: (N, C, H, W) -> (N, C+1, H, W), matching PyTorch MinibatchStd.forward."""
    n, c, h, w = x.shape
    hw = h * w
    m = c * hw
    m_out = m + hw
    x2d = x.reshape(n, m)
    itemsize = jnp.dtype(x.dtype).itemsize

    vmem_cap = _vmem_capacity_bytes()
    budget = vmem_cap * 3 // 8              # ~24 MiB on v7x, ~48 MiB on v5e/v6e
    per_lane = _per_lane_vmem_bytes(n, itemsize)

    if tile is None:
        tile = _pick_tile(n, m, m_out, itemsize, budget)
    else:
        if tile < 128 or tile % 128 != 0 or tile > m:
            raise ValueError(f"tile must be a multiple of 128 in [128, {m}], got {tile}")

    def _vmem_limit(block_lanes):
        # Windows + f32 temporaries + slack, clamped below physical VMEM.
        est = per_lane * block_lanes + (1 << 20)
        return int(min(vmem_cap * 7 // 8, max(16 * 2**20, est + (4 << 20))))

    if tile is None:
        # -------- single-block fallback (tiny activations) --------
        out2d = pl.pallas_call(
            functools.partial(_single_block_kernel, m_total=m, n_batch=n),
            out_shape=jax.ShapeDtypeStruct((n, m_out), x.dtype),
            grid_spec=pltpu.PrefetchScalarGridSpec(
                num_scalar_prefetch=0,
                grid=(1,),
                in_specs=[pl.BlockSpec((n, m), lambda g: (0, 0))],
                out_specs=pl.BlockSpec((n, m_out), lambda g: (0, 0)),
            ),
            compiler_params=pltpu.CompilerParams(
                dimension_semantics=("arbitrary",),
                vmem_limit_bytes=_vmem_limit(m_out),
            ),
            cost_estimate=pl.CostEstimate(
                flops=4 * n * m, transcendentals=m,
                bytes_accessed=(n * m + n * m_out) * itemsize),
        )(x2d)
        return out2d.reshape(n, c + 1, h, w)

    # -------- Pass 1: parallel copy of x columns + per-block std partial sums --------
    nb = pl.cdiv(m, tile)
    vmem_limit = _vmem_limit(tile)
    # NOTE: if an xprof trace shows exposed input DMA on v7x, add
    # pipeline_mode=pl.Buffered(3) to the x BlockSpec (costs one extra window).
    y2d, partials = pl.pallas_call(
        functools.partial(_copy_std_kernel, m_total=m, tile=tile, n_batch=n),
        out_shape=(jax.ShapeDtypeStruct((n, m_out), x.dtype),
                   jax.ShapeDtypeStruct((nb, 8, 128), jnp.float32)),
        grid_spec=pltpu.PrefetchScalarGridSpec(
            num_scalar_prefetch=0,
            grid=(nb,),
            in_specs=[pl.BlockSpec((n, tile), lambda g: (0, g))],
            out_specs=(pl.BlockSpec((n, tile), lambda g: (0, g)),
                       pl.BlockSpec((1, 8, 128), lambda g: (g, 0, 0))),
        ),
        compiler_params=pltpu.CompilerParams(
            # No cross-block state: the copy axis is truly parallel (v7x megacore).
            dimension_semantics=("parallel",),
            vmem_limit_bytes=vmem_limit,
        ),
        cost_estimate=pl.CostEstimate(
            flops=4 * n * m, transcendentals=m,
            bytes_accessed=2 * n * m * itemsize + nb * 4096),
    )(x2d)

    # Scalar = mean over the M per-feature stds (a handful of partials; plain JAX).
    scalar2d = (jnp.sum(partials[:, 0, 0]) / jnp.float32(m)).reshape(1, 1)

    # -------- Pass 2: fill only the trailing stat columns, in place (aliased) --------
    start_blk = m // tile
    n_epi = pl.cdiv(m_out, tile) - start_blk
    out2d = pl.pallas_call(
        functools.partial(_fill_stat_kernel, m_total=m, tile=tile, start_blk=start_blk),
        out_shape=jax.ShapeDtypeStruct((n, m_out), x.dtype),
        grid_spec=pltpu.PrefetchScalarGridSpec(
            num_scalar_prefetch=0,
            grid=(n_epi,),
            in_specs=[pl.BlockSpec(memory_space=pltpu.MemorySpace.SMEM),
                      pl.BlockSpec((n, tile), lambda g: (0, start_blk + g))],
            out_specs=pl.BlockSpec((n, tile), lambda g: (0, start_blk + g)),
        ),
        input_output_aliases={1: 0},   # write the stat slab into y2d in place
        compiler_params=pltpu.CompilerParams(
            dimension_semantics=("arbitrary",),
            vmem_limit_bytes=vmem_limit,
        ),
        cost_estimate=pl.CostEstimate(
            flops=0, transcendentals=0,
            bytes_accessed=2 * n * n_epi * tile * itemsize),
    )(scalar2d, y2d)

    return out2d.reshape(n, c + 1, h, w)


def _reference(x):
    # Pure-JAX reference replicating the PyTorch forward exactly.
    s = jnp.std(x, axis=0, ddof=1).mean().astype(x.dtype)
    stat = jnp.full((x.shape[0], 1, x.shape[2], x.shape[3]), s, dtype=x.dtype)
    return jnp.concatenate([x, stat], axis=1)


if __name__ == "__main__":
    key = jax.random.PRNGKey(0)
    N, C, H, W = 2, 4, 16, 16
    x = jax.random.normal(key, (N, C, H, W), dtype=jnp.float32)
    ref = _reference(x)

    # Auto path (small fused row fits one budgeted block -> single-block kernel).
    out = jax.block_until_ready(minibatch_std(x))
    assert out.shape == (N, C + 1, H, W), out.shape
    assert jnp.allclose(out, ref, atol=1e-5, rtol=1e-5), "mismatch vs reference (auto)"

    # Forced tiles exercise the parallel copy + aliased stat-fill epilogue:
    #   tile=256 -> m % tile == 0, pure-stat epilogue block
    #   tile=384 -> straddle block (masked std partial + preserved x columns)
    for t in (256, 384):
        out_t = jax.block_until_ready(minibatch_std(x, tile=t))
        assert jnp.allclose(out_t, ref, atol=1e-5, rtol=1e-5), f"mismatch (tile={t})"

    # Tiny-activation fallback.
    x_small = jax.random.normal(jax.random.PRNGKey(0), (2, 4, 8, 8), dtype=jnp.float32)
    out_s = jax.block_until_ready(minibatch_std(x_small))
    assert jnp.allclose(out_s, _reference(x_small), atol=1e-5, rtol=1e-5), \
        "mismatch vs reference (fallback)"

    print("KERNEL_OK")
</pallas_src>

<mosaic_0001>
module attributes {stable_mosaic.version = 11 : i64} {
  func.func @_single_block_kernel(%arg0: i32, %arg1: memref<2x1024xf32, #tpu.memory_space<vmem>>, %arg2: memref<2x1280xf32, #tpu.memory_space<vmem>>) attributes {dimension_semantics = [#tpu.dimension_semantics<arbitrary>], iteration_bounds = array<i64: 1>, scalar_prefetch = 0 : i64, scratch_operands = 0 : i64, tpu.core_type = #tpu.core_type<tc>, window_params = [{pipeline_mode = #tpu.pipeline_mode<synchronous>, transform_indices = @transform_0, window_bounds = array<i64: 2, 1024>}, {pipeline_mode = #tpu.pipeline_mode<synchronous>, transform_indices = @transform_1, window_bounds = array<i64: 2, 1280>}]} {
    %c0 = arith.constant 0 : index
    %c0_0 = arith.constant 0 : index
    %0 = vector.load %arg1[%c0, %c0_0] : memref<2x1024xf32, #tpu.memory_space<vmem>>, vector<2x1024xf32>
    %cst = arith.constant dense<0.000000e+00> : vector<1024xf32>
    %1 = vector.multi_reduction <add>, %0, %cst [0] : vector<2x1024xf32> to vector<1024xf32>
    %2 = vector.shape_cast %1 : vector<1024xf32> to vector<1x1024xf32>
    %cst_1 = arith.constant 2.000000e+00 : f32
    %3 = vector.broadcast %cst_1 : f32 to vector<1x1024xf32>
    %4 = arith.divf %2, %3 : vector<1x1024xf32>
    %5 = vector.broadcast %4 : vector<1x1024xf32> to vector<2x1024xf32>
    %6 = arith.subf %0, %5 : vector<2x1024xf32>
    %7 = arith.mulf %6, %6 : vector<2x1024xf32>
    %cst_2 = arith.constant dense<0.000000e+00> : vector<1024xf32>
    %8 = vector.multi_reduction <add>, %7, %cst_2 [0] : vector<2x1024xf32> to vector<1024xf32>
    %9 = vector.shape_cast %8 : vector<1024xf32> to vector<1x1024xf32>
    %cst_3 = arith.constant 1.000000e+00 : f32
    %10 = vector.broadcast %cst_3 : f32 to vector<1x1024xf32>
    %11 = arith.divf %9, %10 : vector<1x1024xf32>
    %12 = math.sqrt %11 : vector<1x1024xf32>
    %13 = vector.shape_cast %12 : vector<1x1024xf32> to vector<1x1x1024xf32>
    %cst_4 = arith.constant dense<0.000000e+00> : vector<1xf32>
    %14 = vector.multi_reduction <add>, %13, %cst_4 [1, 2] : vector<1x1x1024xf32> to vector<1xf32>
    %15 = vector.shape_cast %14 : vector<1xf32> to vector<1x1x1xf32>
    %16 = vector.extract %15[0, 0, 0] : f32 from vector<1x1x1xf32>
    %cst_5 = arith.constant 1.024000e+03 : f32
    %17 = arith.divf %16, %cst_5 : f32
    %c0_6 = arith.constant 0 : index
    %c0_7 = arith.constant 0 : index
    %18 = vector.load %arg2[%c0_6, %c0_7] : memref<2x1280xf32, #tpu.memory_space<vmem>>, vector<2x1024xf32>
    tpu.vector_store %arg2[%c0_6, %c0_7], %0 {strides = array<i32>} : memref<2x1280xf32, #tpu.memory_space<vmem>>, vector<2x1024xf32>,
    %19 = vector.broadcast %17 : f32 to vector<2x256xf32>
    %c0_8 = arith.constant 0 : index
    %c1024 = arith.constant 1024 : index
    %20 = vector.load %arg2[%c0_8, %c1024] : memref<2x1280xf32, #tpu.memory_space<vmem>>, vector<2x256xf32>
    tpu.vector_store %arg2[%c0_8, %c1024], %19 {strides = array<i32>} : memref<2x1280xf32, #tpu.memory_space<vmem>>, vector<2x256xf32>,
    return
  }
  func.func @transform_0(%arg0: i32) -> (i32, i32) {
    %c0_i32 = arith.constant 0 : i32
    %c0_i32_0 = arith.constant 0 : i32
    %c0_i32_1 = arith.constant 0 : i32
    return %c0_i32, %c0_i32_0 : i32, i32
  }
  func.func @transform_1(%arg0: i32) -> (i32, i32) {
    %c0_i32 = arith.constant 0 : i32
    %c0_i32_0 = arith.constant 0 : i32
    %c0_i32_1 = arith.constant 0 : i32
    return %c0_i32, %c0_i32_0 : i32, i32
  }
}

</mosaic_0001>

<bundles_post_ra>
// kernel: minibatch_std.1
= control target key start
LH: loop header
LB: loop body
LE: loop exit
PB: predicated region body
PF: predicated region fallthrough
CT: control target
= control target key end

     0   :  { %v16_v0 = vlaneseq  ;;  %v381_v3 = vmov 1983009808   ;;  %vm54_vm0 = vcmask 1041408   ;;  %vm324_vm3 = vcmask 1040384   ;;  %s521_s0 = inlined_call_operand.vmem [shape: f32[2,1024], index: 0, kind: input, shape index: {}]   ;;  %s522_s1 = inlined_call_operand.vmem [shape: f32[2,1280], index: 1, kind: output, shape index: {}]  }
   0x1   :  { %v395_v1 = vld [vmem:[%s521_s0] sm:$0xff]  ;;  %v400_v2 = vld [vmem:[%s521_s0 + $0x8] sm:$0xff]  ;;  %v14_v4 = vunpack.c.l.s4 %v381_v3 }
   0x2   :  { %v17_v5 = vshrl.u32 %v16_v0, 7  ;;  %v12_v6 = vcombine.high %v395_v1, %v395_v1  ;;  %v29_v8 = vcombine.high %v400_v2, %v400_v2  ;;  %352 = vst [vmem:[%s522_s1] sm:$0xff] %v395_v1  ;;  %353 = vst [vmem:[%s522_s1 + $0x8] sm:$0xff] %v400_v2 }
   0x3   :  { %v15_v7 = vunpack.c.0.s8 %v14_v4 }
   0x5   :  { %v406_v9 = vsub.s32 %v15_v7, %v17_v5 }
   0x7   :  { %v19_v10 = vrot.slane %v395_v1, %v406_v9  ;;  %v26_v11 = vrot.slane %v12_v6, %v406_v9  ;;  %v36_v12 = vrot.slane %v400_v2, %v406_v9  ;;  %v43_v13 = vrot.slane %v29_v8, %v406_v9 }
   0x9   :  { %v27_v14 = vcombine.high %v19_v10, %v19_v10  ;;  %v28_v15 = vcombine.high %v26_v11, %v26_v11  ;;  %v44_v16 = vcombine.high %v36_v12, %v36_v12  ;;  %v45_v17 = vcombine.high %v43_v13, %v43_v13 }
   0xa   :  { %v55_v18 = vsel %vm54_vm0, %v19_v10, 0.0  ;;  %v69_v19 = vsel %vm54_vm0, %v26_v11, 0.0  ;;  %v83_v20 = vsel %vm54_vm0, %v36_v12, 0.0  ;;  %v97_v21 = vsel %vm54_vm0, %v43_v13, 0.0 }
   0xb   :  { %v56_v22 = vrot.slane %v55_v18, 4  ;;  %v62_v23 = vsel %vm54_vm0, %v27_v14, 0.0  ;;  %v70_v24 = vrot.slane %v69_v19, 4  ;;  %v76_v25 = vsel %vm54_vm0, %v28_v15, 0.0 }
   0xc   :  { %v63_v26 = vrot.slane %v62_v23, 4  ;;  %v77_v27 = vrot.slane %v76_v25, 4  ;;  %v84_v28 = vrot.slane %v83_v20, 4  ;;  %v90_v29 = vsel %vm54_vm0, %v44_v16, 0.0 }
   0xd   :  { %v57_v30 = vadd.f32 %v56_v22, %v55_v18  ;;  %v71_v31 = vadd.f32 %v70_v24, %v69_v19  ;;  %v91_v32 = vrot.slane %v90_v29, 4  ;;  %v98_v33 = vrot.slane %v97_v21, 4 }
   0xe   :  { %v64_v34 = vadd.f32 %v63_v26, %v62_v23  ;;  %v78_v35 = vadd.f32 %v77_v27, %v76_v25  ;;  %v85_v36 = vadd.f32 %v84_v28, %v83_v20  ;;  %v104_v37 = vsel %vm54_vm0, %v45_v17, 0.0 }
   0xf   :  { %v58_v38 = vrot.slane %v57_v30, 2  ;;  %v72_v39 = vrot.slane %v71_v31, 2  ;;  %v92_v40 = vadd.f32 %v91_v32, %v90_v29  ;;  %v99_v41 = vadd.f32 %v98_v33, %v97_v21 }
  0x10   :  { %v65_v42 = vrot.slane %v64_v34, 2  ;;  %v79_v43 = vrot.slane %v78_v35, 2  ;;  %v86_v44 = vrot.slane %v85_v36, 2  ;;  %v105_v45 = vrot.slane %v104_v37, 4 }
  0x11   :  { %v59_v46 = vadd.f32 %v58_v38, %v57_v30  ;;  %v73_v47 = vadd.f32 %v72_v39, %v71_v31  ;;  %v93_v48 = vrot.slane %v92_v40, 2  ;;  %v100_v49 = vrot.slane %v99_v41, 2 }
  0x12   :  { %v66_v50 = vadd.f32 %v65_v42, %v64_v34  ;;  %v80_v51 = vadd.f32 %v79_v43, %v78_v35  ;;  %v87_v52 = vadd.f32 %v86_v44, %v85_v36  ;;  %v106_v53 = vadd.f32 %v105_v45, %v104_v37 }
  0x13   :  { %v60_v54 = vrot.slane %v59_v46, 1  ;;  %v74_v55 = vrot.slane %v73_v47, 1  ;;  %v94_v56 = vadd.f32 %v93_v48, %v92_v40  ;;  %v101_v57 = vadd.f32 %v100_v49, %v99_v41 }
  0x14   :  { %v67_v58 = vrot.slane %v66_v50, 1  ;;  %v81_v59 = vrot.slane %v80_v51, 1  ;;  %v88_v60 = vrot.slane %v87_v52, 1  ;;  %v107_v61 = vrot.slane %v106_v53, 2 }
  0x15   :  { %v61_v62 = vadd.f32 %v60_v54, %v59_v46  ;;  %v75_v63 = vadd.f32 %v74_v55, %v73_v47  ;;  %v95_v0 = vrot.slane %v94_v56, 1  ;;  %v102_v3 = vrot.slane %v101_v57, 1 }
  0x16   :  { %v68_v4 = vadd.f32 %v67_v58, %v66_v50  ;;  %v82_v5 = vadd.f32 %v81_v59, %v80_v51  ;;  %v89_v6 = vadd.f32 %v88_v60, %v87_v52  ;;  %v108_v7 = vadd.f32 %v107_v61, %v106_v53 }
  0x17   :  { %v96_v8 = vadd.f32 %v95_v0, %v94_v56  ;;  %v103_v10 = vadd.f32 %v102_v3, %v101_v57  ;;  %v112_v11 = vmul.f32 0.5, %v61_v62  ;;  %v114_v12 = vmul.f32 0.5, %v75_v63 }
  0x18   :  { %v109_v13 = vrot.slane %v108_v7, 1  ;;  %v113_v14 = vmul.f32 0.5, %v68_v4  ;;  %v115_v15 = vmul.f32 0.5, %v82_v5  ;;  %v116_v16 = vmul.f32 0.5, %v89_v6 }
  0x19   :  { %v117_v17 = vmul.f32 0.5, %v96_v8  ;;  %v118_v19 = vmul.f32 0.5, %v103_v10 }
  0x1a   :  { %v110_v18 = vadd.f32 %v109_v13, %v108_v7  ;;  %v128_v20 = vcombine.low %v112_v11, %v113_v14  ;;  %v129_v21 = vcombine.low %v114_v12, %v115_v15 }
  0x1b   :  { %v145_v22 = vcombine.low %v116_v16, %v117_v17 }
  0x1c   :  { %v119_v23 = vmul.f32 0.5, %v110_v18  ;;  %v136_v24 = vrot.slane %v128_v20, %v406_v9  ;;  %v143_v25 = vrot.slane %v129_v21, %v406_v9 }
  0x1d   :  { %v153_v28 = vrot.slane %v145_v22, %v406_v9 }
  0x1e   :  { %v144_v26 = vcombine.low %v136_v24, %v143_v25  ;;  %v146_v27 = vcombine.low %v118_v19, %v119_v23 }
  0x20   :  { %v160_v29 = vrot.slane %v146_v27, %v406_v9  ;;  %v164_v30 = vsub.f32 %v395_v1, %v144_v26 }
  0x22   :  { %v161_v31 = vcombine.low %v153_v28, %v160_v29  ;;  %v166_v32 = vmul.f32 %v164_v30, %v164_v30 }
  0x24   :  { %v165_v33 = vsub.f32 %v400_v2, %v161_v31  ;;  %v170_v34 = vcombine.high %v166_v32, %v166_v32  ;;  %v177_v35 = vrot.slane %v166_v32, %v406_v9 }
  0x26   :  { %v167_v36 = vmul.f32 %v165_v33, %v165_v33  ;;  %v184_v37 = vrot.slane %v170_v34, %v406_v9  ;;  %v185_v38 = vcombine.high %v177_v35, %v177_v35  ;;  %v212_v39 = vsel %vm54_vm0, %v177_v35, 0.0 }
  0x27   :  { %v213_v40 = vrot.slane %v212_v39, 4 }
  0x28   :  { %v186_v41 = vcombine.high %v184_v37, %v184_v37  ;;  %v187_v42 = vcombine.high %v167_v36, %v167_v36  ;;  %v194_v43 = vrot.slane %v167_v36, %v406_v9  ;;  %v219_v44 = vsel %vm54_vm0, %v185_v38, 0.0 }
  0x29   :  { %v214_v45 = vadd.f32 %v213_v40, %v212_v39  ;;  %v220_v46 = vrot.slane %v219_v44, 4  ;;  %v226_v47 = vsel %vm54_vm0, %v184_v37, 0.0 }
  0x2a   :  { %v201_v48 = vrot.slane %v187_v42, %v406_v9  ;;  %v202_v49 = vcombine.high %v194_v43, %v194_v43  ;;  %v227_v50 = vrot.slane %v226_v47, 4  ;;  %v233_v51 = vsel %vm54_vm0, %v186_v41, 0.0 }
  0x2b   :  { %v215_v52 = vrot.slane %v214_v45, 2  ;;  %v221_v53 = vadd.f32 %v220_v46, %v219_v44  ;;  %v234_v54 = vrot.slane %v233_v51, 4  ;;  %v240_v55 = vsel %vm54_vm0, %v194_v43, 0.0 }
  0x2c   :  { %v203_v56 = vcombine.high %v201_v48, %v201_v48  ;;  %v228_v57 = vadd.f32 %v227_v50, %v226_v47  ;;  %v241_v58 = vrot.slane %v240_v55, 4  ;;  %v247_v59 = vsel %vm54_vm0, %v202_v49, 0.0 }
  0x2d   :  { %v216_v60 = vadd.f32 %v215_v52, %v214_v45  ;;  %v222_v61 = vrot.slane %v221_v53, 2  ;;  %v235_v62 = vadd.f32 %v234_v54, %v233_v51  ;;  %v248_v63 = vrot.slane %v247_v59, 4 }
  0x2e   :  { %v229_v0 = vrot.slane %v228_v57, 2  ;;  %v242_v9 = vadd.f32 %v241_v58, %v240_v55  ;;  %v254_v3 = vsel %vm54_vm0, %v201_v48, 0.0  ;;  %v261_v4 = vsel %vm54_vm0, %v203_v56, 0.0 }
  0x2f   :  { %v217_v5 = vrot.slane %v216_v60, 1  ;;  %v223_v6 = vadd.f32 %v222_v61, %v221_v53  ;;  %v236_v7 = vrot.slane %v235_v62, 2  ;;  %v249_v8 = vadd.f32 %v248_v63, %v247_v59 }
  0x30   :  { %v230_v10 = vadd.f32 %v229_v0, %v228_v57  ;;  %v243_v11 = vrot.slane %v242_v9, 2  ;;  %v255_v12 = vrot.slane %v254_v3, 4  ;;  %v262_v13 = vrot.slane %v261_v4, 4 }
  0x31   :  { %v218_v14 = vadd.f32 %v217_v5, %v216_v60  ;;  %v224_v15 = vrot.slane %v223_v6, 1  ;;  %v237_v16 = vadd.f32 %v236_v7, %v235_v62  ;;  %v250_v17 = vrot.slane %v249_v8, 2 }
  0x32   :  { %v231_v18 = vrot.slane %v230_v10, 1  ;;  %v244_v19 = vadd.f32 %v243_v11, %v242_v9  ;;  %v256_v20 = vadd.f32 %v255_v12, %v254_v3  ;;  %v263_v21 = vadd.f32 %v262_v13, %v261_v4 }
  0x33   :  { %v225_v22 = vadd.f32 %v224_v15, %v223_v6  ;;  %v238_v23 = vrot.slane %v237_v16, 1  ;;  %v251_v24 = vadd.f32 %v250_v17, %v249_v8  ;;  %365 = vrsqrt.f32 %v218_v14 }
  0x34   :  { %v232_v25 = vadd.f32 %v231_v18, %v230_v10  ;;  %v245_v26 = vrot.slane %v244_v19, 1  ;;  %v257_v27 = vrot.slane %v256_v20, 2  ;;  %v264_v28 = vrot.slane %v263_v21, 2 }
  0x35   :  { %v440_v29 = vadd.f32 %v238_v23, %v237_v16  ;;  %v252_v30 = vrot.slane %v251_v24, 1  ;;  %367 = vrsqrt.f32 %v225_v22  ;;  %vm270_vm1 = vcmp.eq.f32.partialorder %v218_v14, inf }
  0x36   :  { %v258_v31 = vadd.f32 %v257_v27, %v256_v20  ;;  %v265_v32 = vadd.f32 %v264_v28, %v263_v21  ;;  %v442_v33 = vadd.f32 %v245_v26, %v244_v19  ;;  %369 = vrsqrt.f32 %v232_v25 }
  0x37   :  { %v444_v34 = vadd.f32 %v252_v30, %v251_v24  ;;  %371 = vrsqrt.f32 %v440_v29  ;;  %v273_v40 = vand.u32 2147483648, %v218_v14  ;;  %vm272_vm2 = vcmp.eq.f32.partialorder %v218_v14, 0.0 }
  0x38   :  { %v259_v35 = vrot.slane %v258_v31, 1  ;;  %v266_v36 = vrot.slane %v265_v32, 1  ;;  %373 = vrsqrt.f32 %v442_v33  ;;  %vm277_vm4 = vcmp.eq.f32.partialorder %v225_v22, inf }
  0x39   :  { %375 = vrsqrt.f32 %v444_v34  ;;  %vm279_vm5 = vcmp.eq.f32.partialorder %v225_v22, 0.0  ;;  %v280_v42 = vand.u32 2147483648, %v225_v22  ;;  %vm284_vm6 = vcmp.eq.f32.partialorder %v232_v25, inf }
  0x3a   :  { %v447_v37 = vadd.f32 %v259_v35, %v258_v31  ;;  %v449_v38 = vadd.f32 %v266_v36, %v265_v32  ;;  %vm286_vm7 = vcmp.eq.f32.partialorder %v232_v25, 0.0  ;;  %v287_v44 = vand.u32 2147483648, %v232_v25 }
  0x3b   :  { %vm291_vm8 = vcmp.eq.f32.partialorder %v440_v29, inf  ;;  %vm293_vm9 = vcmp.eq.f32.partialorder %v440_v29, 0.0  ;;  %v294_v47 = vand.u32 2147483648, %v440_v29  ;;  %vm298_vm10 = vcmp.eq.f32.partialorder %v442_v33, inf }
  0x3c   :  { %377 = vrsqrt.f32 %v447_v37  ;;  %vm300_vm11 = vcmp.eq.f32.partialorder %v442_v33, 0.0  ;;  %v301_v50 = vand.u32 2147483648, %v442_v33  ;;  %vm305_vm12 = vcmp.eq.f32.partialorder %v444_v34, inf }
  0x3d   :  { %v366_v39 = vpop.eup %365  ;;  %379 = vrsqrt.f32 %v449_v38  ;;  %vm307_vm13 = vcmp.eq.f32.partialorder %v444_v34, 0.0  ;;  %v308_v53 = vand.u32 2147483648, %v444_v34  ;;  %vm312_vm14 = vcmp.eq.f32.partialorder %v447_v37, inf }
  0x3e   :  { %v269_v41 = vmul.f32 %v366_v39, %v218_v14  ;;  %vm314_vm15 = vcmp.eq.f32.partialorder %v447_v37, 0.0  ;;  %v315_v60 = vand.u32 2147483648, %v447_v37  ;;  %vm319_vm0 = vcmp.eq.f32.partialorder %v449_v38, inf }
  0x3f   :  { %v368_v45 = vpop.eup %367  ;;  %v322_v12 = vand.u32 2147483648, %v449_v38 }
  0x40   :  { %v271_v43 = vsel %vm270_vm1, %v218_v14, %v269_v41  ;;  %v370_v48 = vpop.eup %369  ;;  %v276_v49 = vmul.f32 %v368_v45, %v225_v22  ;;  %vm321_vm1 = vcmp.eq.f32.partialorder %v449_v38, 0.0 }
  0x41   :  { %v274_v46 = vsel %vm272_vm2, %v273_v40, %v271_v43  ;;  %v372_v51 = vpop.eup %371  ;;  %v283_v52 = vmul.f32 %v370_v48, %v232_v25 }
  0x42   :  { %v278_v54 = vsel %vm277_vm4, %v225_v22, %v276_v49  ;;  %v290_v55 = vmul.f32 %v372_v51, %v440_v29  ;;  %v325_v56 = vsel %vm324_vm3, %v274_v46, 0.0  ;;  %v374_v57 = vpop.eup %373 }
  0x43   :  { %v281_v58 = vsel %vm279_vm5, %v280_v42, %v278_v54  ;;  %v285_v59 = vsel %vm284_vm6, %v232_v25, %v283_v52  ;;  %v376_v61 = vpop.eup %375  ;;  %v297_v0 = vmul.f32 %v374_v57, %v442_v33 }
  0x44   :  { %v288_v62 = vsel %vm286_vm7, %v287_v44, %v285_v59  ;;  %v292_v63 = vsel %vm291_vm8, %v440_v29, %v290_v55  ;;  %v326_v9 = vsel %vm324_vm3, %v281_v58, 0.0  ;;  %v304_v5 = vmul.f32 %v376_v61, %v444_v34 }
  0x45   :  { %v295_v4 = vsel %vm293_vm9, %v294_v47, %v292_v63  ;;  %v327_v6 = vadd.f32 %v326_v9, %v325_v56  ;;  %v328_v7 = vsel %vm324_vm3, %v288_v62, 0.0  ;;  %v299_v10 = vsel %vm298_vm10, %v442_v33, %v297_v0 }
  0x46   :  { %v378_v3 = vpop.eup %377  ;;  %v330_v13 = vsel %vm324_vm3, %v295_v4, 0.0  ;;  %v302_v14 = vsel %vm300_vm11, %v301_v50, %v299_v10  ;;  %v306_v15 = vsel %vm305_vm12, %v444_v34, %v304_v5 }
  0x47   :  { %v380_v8 = vpop.eup %379  ;;  %v311_v11 = vmul.f32 %v378_v3, %v447_v37  ;;  %v329_v17 = vadd.f32 %v328_v7, %v327_v6  ;;  %v309_v18 = vsel %vm307_vm13, %v308_v53, %v306_v15  ;;  %v332_v20 = vsel %vm324_vm3, %v302_v14, 0.0 }
  0x48   :  { %v318_v16 = vmul.f32 %v380_v8, %v449_v38  ;;  %v334_v24 = vsel %vm324_vm3, %v309_v18, 0.0 }
  0x49   :  { %v313_v19 = vsel %vm312_vm14, %v447_v37, %v311_v11  ;;  %v331_v23 = vadd.f32 %v330_v13, %v329_v17 }
  0x4a   :  { %v316_v21 = vsel %vm314_vm15, %v315_v60, %v313_v19  ;;  %v320_v22 = vsel %vm319_vm0, %v449_v38, %v318_v16 }
  0x4b   :  { %v323_v25 = vsel %vm321_vm1, %v322_v12, %v320_v22  ;;  %v333_v26 = vadd.f32 %v332_v20, %v331_v23  ;;  %v336_v27 = vsel %vm324_vm3, %v316_v21, 0.0 }
  0x4c   :  { %v338_v29 = vsel %vm324_vm3, %v323_v25, 0.0 }
  0x4d   :  { %v335_v28 = vadd.f32 %v334_v24, %v333_v26 }
  0x4f   :  { %v337_v30 = vadd.f32 %v336_v27, %v335_v28 }
  0x51   :  { %v339_v31 = vadd.f32 %v338_v29, %v337_v30 }
  0x53   :  { %340 = vadd.xlane.f32.xlu0 %v339_v31 }
  0xe0   :  { %v341_v32 = vpop.xlane.xlu0 %340 }
  0xe1   :  { %v342_v33 = vrot.slane %v341_v32, 4 }
  0xe3   :  { %v343_v34 = vadd.f32 %v342_v33, %v341_v32 }
  0xe5   :  { %v344_v35 = vrot.slane %v343_v34, 2 }
  0xe7   :  { %v345_v36 = vadd.f32 %v344_v35, %v343_v34 }
  0xe9   :  { %v346_v37 = vrot.slane %v345_v36, 1 }
  0xeb   :  { %v347_v38 = vadd.f32 %v346_v37, %v345_v36 }
  0xed   :  { %360 = vpush %v347_v38 }
 0x11e   :  { %s361_s13 = spop %360 }
 0x11f   :  { %s351_s14 = smul.f32 0.0009765625, %s361_s13 }
 0x121   :  { %v354_v39 = vstv %s351_s14 }
 0x122   :  { %355 = vst [vmem:[%s522_s1 + $0x10] sm:$0xf] %v354_v39 }

</bundles_post_ra>
